<compile_context>
chip_gen: v7x
topology: tpu7x:2x2x1
jax: 0.10.0
libtpu: 0.0.40
codegen_flags: <defaults>
</compile_context>

<pallas_src>
import jax
import jax.numpy as jnp
from jax.experimental import pallas as pl
from jax.experimental.pallas import tpu as pltpu


def _bcast_mul_kernel(scale_ref, x_ref, o_ref):
    # scale_ref: (TM, 1), x_ref/o_ref: (TM, HW).
    # (TM, 1) broadcasts across the lane (spatial) axis on the VPU.
    o_ref[...] = x_ref[...] * scale_ref[...]


def broadcast_mul(x145, x140):
    """Computes x145 * x140 with PyTorch broadcasting semantics.

    x145: (N, C, 1, 1), x140: (N, C, H, W)  ->  (N, C, H, W)
    """
    n, c, h, w = x140.shape
    assert x145.shape == (n, c, 1, 1)

    nc = n * c
    hw = h * w

    x2d = x140.reshape(nc, hw)
    s2d = x145.astype(x140.dtype).reshape(nc, 1)

    # Row-tile selection: biggest tile that keeps the double-buffered x tile
    # around ~2 MiB (so 2 bufs x (x + out) + scale stays far below the
    # smallest scoped-VMEM budget across generations).  If the whole array
    # fits under that cap, use a single full-extent block (one grid step).
    itemsize = jnp.dtype(x140.dtype).itemsize
    max_rows_by_vmem = max(8, (2 * 1024 * 1024) // max(1, hw * itemsize))
    tm = min(nc, max_rows_by_vmem)
    if tm != nc:
        # Keep the sublane axis tidy (multiple of 8) when actually tiling.
        tm = max(8, (tm // 8) * 8)
    grid = (pl.cdiv(nc, tm),)

    out2d = pl.pallas_call(
        _bcast_mul_kernel,
        out_shape=jax.ShapeDtypeStruct((nc, hw), x140.dtype),
        grid=grid,
        in_specs=[
            pl.BlockSpec((tm, 1), lambda i: (i, 0)),
            pl.BlockSpec((tm, hw), lambda i: (i, 0)),
        ],
        out_specs=pl.BlockSpec((tm, hw), lambda i: (i, 0)),
        compiler_params=pltpu.CompilerParams(
            dimension_semantics=("parallel",),
        ),
    )(s2d, x2d)

    return out2d.reshape(n, c, h, w)


if __name__ == "__main__":
    key = jax.random.PRNGKey(0)
    k1, k2 = jax.random.split(key)

    # Shapes from the reference module: x140 [1, 672, 14, 14], x145 [1, 672, 1, 1]
    x140 = jax.random.normal(k1, (1, 672, 14, 14), dtype=jnp.float32)
    x145 = jax.random.normal(k2, (1, 672, 1, 1), dtype=jnp.float32)

    out = broadcast_mul(x145, x140)
    out = jax.block_until_ready(out)

    ref = x145 * x140
    assert out.shape == ref.shape
    assert jnp.allclose(out, ref, atol=1e-6, rtol=1e-6)

    print("KERNEL_OK")
</pallas_src>

<mosaic_0001>
module attributes {stable_mosaic.version = 11 : i64} {
  func.func @_bcast_mul_kernel(%arg0: i32, %arg1: memref<672x1xf32, #tpu.memory_space<vmem>>, %arg2: memref<672x196xf32, #tpu.memory_space<vmem>>, %arg3: memref<672x196xf32, #tpu.memory_space<vmem>>) attributes {dimension_semantics = [#tpu.dimension_semantics<parallel>], iteration_bounds = array<i64: 1>, scalar_prefetch = 0 : i64, scratch_operands = 0 : i64, tpu.core_type = #tpu.core_type<tc>, window_params = [{transform_indices = @transform_0, window_bounds = array<i64: 672, 1>}, {transform_indices = @transform_1, window_bounds = array<i64: 672, 196>}, {transform_indices = @transform_2, window_bounds = array<i64: 672, 196>}]} {
    %c0 = arith.constant 0 : index
    %c0_0 = arith.constant 0 : index
    %0 = vector.load %arg2[%c0, %c0_0] : memref<672x196xf32, #tpu.memory_space<vmem>>, vector<672x196xf32>
    %c0_1 = arith.constant 0 : index
    %c0_2 = arith.constant 0 : index
    %1 = vector.load %arg1[%c0_1, %c0_2] : memref<672x1xf32, #tpu.memory_space<vmem>>, vector<672x1xf32>
    %2 = vector.broadcast %1 : vector<672x1xf32> to vector<672x196xf32>
    %3 = arith.mulf %0, %2 : vector<672x196xf32>
    %c0_3 = arith.constant 0 : index
    %c0_4 = arith.constant 0 : index
    %4 = vector.load %arg3[%c0_3, %c0_4] : memref<672x196xf32, #tpu.memory_space<vmem>>, vector<672x196xf32>
    tpu.vector_store %arg3[%c0_3, %c0_4], %3 {strides = array<i32>} : memref<672x196xf32, #tpu.memory_space<vmem>>, vector<672x196xf32>,
    return
  }
  func.func @transform_0(%arg0: i32) -> (i32, i32) {
    %c0_i32 = arith.constant 0 : i32
    %c0_i32_0 = arith.constant 0 : i32
    return %arg0, %c0_i32 : i32, i32
  }
  func.func @transform_1(%arg0: i32) -> (i32, i32) {
    %c0_i32 = arith.constant 0 : i32
    %c0_i32_0 = arith.constant 0 : i32
    return %arg0, %c0_i32 : i32, i32
  }
  func.func @transform_2(%arg0: i32) -> (i32, i32) {
    %c0_i32 = arith.constant 0 : i32
    %c0_i32_0 = arith.constant 0 : i32
    return %arg0, %c0_i32 : i32, i32
  }
}

</mosaic_0001>

<bundles_post_ra>
// kernel: tpu_custom_call.1
= control target key start
LH: loop header
LB: loop body
LE: loop exit
PB: predicated region body
PF: predicated region fallthrough
CT: control target
= control target key end

     0   :  { %v1027_v0 = vmov 0   ;;  %vm852_vm0 = vcmask 556032   ;;  %s2387_s0 = inlined_call_operand.vmem [shape: f32[672,1], index: 0, kind: input, shape index: {}]   ;;  %s2388_s1 = inlined_call_operand.vmem [shape: f32[672,196], index: 1, kind: input, shape index: {}]   ;;  %s2389_s2 = inlined_call_operand.vmem [shape: f32[672,196], index: 2, kind: output, shape index: {}]  }
   0x1   :  { %1026 = vset.pattern.permute.xlu1 %v1027_v0  ;;  %1025 = vset.pattern.permute.xlu0 %v1027_v0  ;;  %v181_v1 = vld [vmem:[%s2387_s0 + $0x10] sm:$0xff]  ;;  %v179_v2 = vld [vmem:[%s2387_s0] sm:$0xff]  ;;  %v182_v3 = vld [vmem:[%s2387_s0 + $0x18] sm:$0xff] }
   0x2   :  { %275 = vperm.xlu1 %1026, %v181_v1   ;;  %265 = vperm.xlu0 %1025, %v179_v2   ;;  %v180_v4 = vld [vmem:[%s2387_s0 + $0x8] sm:$0xff]  ;;  %v183_v6 = vld [vmem:[%s2387_s0 + $0x20] sm:$0xff]  ;;  %v186_v7 = vld [vmem:[%s2387_s0 + $0x38] sm:$0xff] }
   0x3   :  { %v184_v5 = vld [vmem:[%s2387_s0 + $0x28] sm:$0xff]  ;;  %v185_v8 = vld [vmem:[%s2387_s0 + $0x30] sm:$0xff]  ;;  %v187_v10 = vld [vmem:[%s2387_s0 + $0x40] sm:$0xff] }
   0x4   :  { %v188_v9 = vld [vmem:[%s2387_s0 + $0x48] sm:$0xff]  ;;  %v190_v11 = vld [vmem:[%s2387_s0 + $0x58] sm:$0xff]  ;;  %v189_v12 = vld [vmem:[%s2387_s0 + $0x50] sm:$0xff] }
   0x5   :  { %v192_v13 = vld [vmem:[%s2387_s0 + $0x68] sm:$0xff]  ;;  %v191_v14 = vld [vmem:[%s2387_s0 + $0x60] sm:$0xff]  ;;  %v194_v15 = vld [vmem:[%s2387_s0 + $0x78] sm:$0xff] }
   0x6   :  { %280 = vperm.xlu1 %1026, %v182_v3   ;;  %270 = vperm.xlu0 %1025, %v180_v4   ;;  %v193_v16 = vld [vmem:[%s2387_s0 + $0x70] sm:$0xff]  ;;  %v196_v17 = vld [vmem:[%s2387_s0 + $0x88] sm:$0xff]  ;;  %v195_v18 = vld [vmem:[%s2387_s0 + $0x80] sm:$0xff] }
   0x7   :  { %v198_v19 = vld [vmem:[%s2387_s0 + $0x98] sm:$0xff]  ;;  %v197_v20 = vld [vmem:[%s2387_s0 + $0x90] sm:$0xff]  ;;  %v200_v21 = vld [vmem:[%s2387_s0 + $0xa8] sm:$0xff] }
   0x8   :  { %v199_v22 = vld [vmem:[%s2387_s0 + $0xa0] sm:$0xff]  ;;  %v202_v23 = vld [vmem:[%s2387_s0 + $0xb8] sm:$0xff]  ;;  %v201_v24 = vld [vmem:[%s2387_s0 + $0xb0] sm:$0xff] }
   0x9   :  { %v204_v25 = vld [vmem:[%s2387_s0 + $0xc8] sm:$0xff]  ;;  %v203_v26 = vld [vmem:[%s2387_s0 + $0xc0] sm:$0xff]  ;;  %v206_v27 = vld [vmem:[%s2387_s0 + $0xd8] sm:$0xff] }
   0xa   :  { %290 = vperm.xlu1 %1026, %v184_v5   ;;  %285 = vperm.xlu0 %1025, %v183_v6   ;;  %v205_v28 = vld [vmem:[%s2387_s0 + $0xd0] sm:$0xff]  ;;  %v208_v29 = vld [vmem:[%s2387_s0 + $0xe8] sm:$0xff]  ;;  %v207_v30 = vld [vmem:[%s2387_s0 + $0xe0] sm:$0xff] }
   0xb   :  { %v210_v31 = vld [vmem:[%s2387_s0 + $0xf8] sm:$0xff]  ;;  %v209_v32 = vld [vmem:[%s2387_s0 + $0xf0] sm:$0xff]  ;;  %v212_v33 = vld [vmem:[%s2387_s0 + $0x108] sm:$0xff] }
   0xc   :  { %v211_v34 = vld [vmem:[%s2387_s0 + $0x100] sm:$0xff]  ;;  %v214_v35 = vld [vmem:[%s2387_s0 + $0x118] sm:$0xff]  ;;  %v213_v36 = vld [vmem:[%s2387_s0 + $0x110] sm:$0xff] }
   0xd   :  { %v216_v37 = vld [vmem:[%s2387_s0 + $0x128] sm:$0xff]  ;;  %v215_v38 = vld [vmem:[%s2387_s0 + $0x120] sm:$0xff]  ;;  %v218_v39 = vld [vmem:[%s2387_s0 + $0x138] sm:$0xff] }
   0xe   :  { %300 = vperm.xlu1 %1026, %v186_v7   ;;  %295 = vperm.xlu0 %1025, %v185_v8   ;;  %v217_v40 = vld [vmem:[%s2387_s0 + $0x130] sm:$0xff]  ;;  %v220_v41 = vld [vmem:[%s2387_s0 + $0x148] sm:$0xff]  ;;  %v219_v42 = vld [vmem:[%s2387_s0 + $0x140] sm:$0xff] }
   0xf   :  { %v222_v43 = vld [vmem:[%s2387_s0 + $0x158] sm:$0xff]  ;;  %v221_v44 = vld [vmem:[%s2387_s0 + $0x150] sm:$0xff]  ;;  %v224_v45 = vld [vmem:[%s2387_s0 + $0x168] sm:$0xff] }
  0x10   :  { %v223_v46 = vld [vmem:[%s2387_s0 + $0x160] sm:$0xff]  ;;  %v226_v47 = vld [vmem:[%s2387_s0 + $0x178] sm:$0xff]  ;;  %v225_v48 = vld [vmem:[%s2387_s0 + $0x170] sm:$0xff] }
  0x11   :  { %v228_v49 = vld [vmem:[%s2387_s0 + $0x188] sm:$0xff]  ;;  %v227_v50 = vld [vmem:[%s2387_s0 + $0x180] sm:$0xff]  ;;  %v230_v51 = vld [vmem:[%s2387_s0 + $0x198] sm:$0xff] }
  0x12   :  { %310 = vperm.xlu1 %1026, %v188_v9   ;;  %305 = vperm.xlu0 %1025, %v187_v10   ;;  %v229_v52 = vld [vmem:[%s2387_s0 + $0x190] sm:$0xff]  ;;  %v232_v53 = vld [vmem:[%s2387_s0 + $0x1a8] sm:$0xff]  ;;  %v231_v54 = vld [vmem:[%s2387_s0 + $0x1a0] sm:$0xff] }
  0x13   :  { %v234_v55 = vld [vmem:[%s2387_s0 + $0x1b8] sm:$0xff]  ;;  %v233_v56 = vld [vmem:[%s2387_s0 + $0x1b0] sm:$0xff]  ;;  %v236_v57 = vld [vmem:[%s2387_s0 + $0x1c8] sm:$0xff] }
  0x14   :  { %v235_v58 = vld [vmem:[%s2387_s0 + $0x1c0] sm:$0xff]  ;;  %v238_v59 = vld [vmem:[%s2387_s0 + $0x1d8] sm:$0xff]  ;;  %v237_v60 = vld [vmem:[%s2387_s0 + $0x1d0] sm:$0xff] }
  0x15   :  { %v240_v61 = vld [vmem:[%s2387_s0 + $0x1e8] sm:$0xff]  ;;  %v239_v62 = vld [vmem:[%s2387_s0 + $0x1e0] sm:$0xff]  ;;  %v242_v63 = vld [vmem:[%s2387_s0 + $0x1f8] sm:$0xff] }
  0x16   :  { %320 = vperm.xlu1 %1026, %v190_v11   ;;  %315 = vperm.xlu0 %1025, %v189_v12   ;;  %v241_v0 = vld [vmem:[%s2387_s0 + $0x1f0] sm:$0xff]  ;;  %v15_v1 = vld [vmem:[%s2388_s1 + $0x20] sm:$0xff]  ;;  %v16_v2 = vld [vmem:[%s2388_s1 + $0x28] sm:$0xff] }
  0x17   :  { %v11_v3 = vld [vmem:[%s2388_s1] sm:$0xff]  ;;  %v12_v4 = vld [vmem:[%s2388_s1 + $0x8] sm:$0xff] }
  0x18   :  { %v244_v5 = vld [vmem:[%s2387_s0 + $0x208] sm:$0xff]  ;;  %v243_v6 = vld [vmem:[%s2387_s0 + $0x200] sm:$0xff] }
  0x1a   :  { %330 = vperm.xlu1 %1026, %v192_v13   ;;  %325 = vperm.xlu0 %1025, %v191_v14   ;;  %v17_v13 = vld [vmem:[%s2388_s1 + $0x30] sm:$0xff]  ;;  %v18_v14 = vld [vmem:[%s2388_s1 + $0x38] sm:$0xff] }
  0x1e   :  { %340 = vperm.xlu1 %1026, %v194_v15   ;;  %335 = vperm.xlu0 %1025, %v193_v16   ;;  %v13_v15 = vld [vmem:[%s2388_s1 + $0x10] sm:$0xff]  ;;  %v14_v16 = vld [vmem:[%s2388_s1 + $0x18] sm:$0xff] }
  0x22   :  { %350 = vperm.xlu1 %1026, %v196_v17   ;;  %345 = vperm.xlu0 %1025, %v195_v18   ;;  %v246_v17 = vld [vmem:[%s2387_s0 + $0x218] sm:$0xff]  ;;  %v245_v18 = vld [vmem:[%s2387_s0 + $0x210] sm:$0xff] }
  0x26   :  { %360 = vperm.xlu1 %1026, %v198_v19   ;;  %355 = vperm.xlu0 %1025, %v197_v20  }
  0x2a   :  { %370 = vperm.xlu1 %1026, %v200_v21   ;;  %365 = vperm.xlu0 %1025, %v199_v22  }
  0x2e   :  { %380 = vperm.xlu1 %1026, %v202_v23   ;;  %375 = vperm.xlu0 %1025, %v201_v24  }
  0x32   :  { %390 = vperm.xlu1 %1026, %v204_v25   ;;  %385 = vperm.xlu0 %1025, %v203_v26   ;;  %v21_v25 = vld [vmem:[%s2388_s1 + $0x50] sm:$0xff]  ;;  %v22_v26 = vld [vmem:[%s2388_s1 + $0x58] sm:$0xff] }
  0x36   :  { %400 = vperm.xlu1 %1026, %v206_v27   ;;  %395 = vperm.xlu0 %1025, %v205_v28   ;;  %v19_v27 = vld [vmem:[%s2388_s1 + $0x40] sm:$0xff]  ;;  %v20_v28 = vld [vmem:[%s2388_s1 + $0x48] sm:$0xff] }
  0x3a   :  { %410 = vperm.xlu1 %1026, %v208_v29   ;;  %405 = vperm.xlu0 %1025, %v207_v30   ;;  %v248_v29 = vld [vmem:[%s2387_s0 + $0x228] sm:$0xff]  ;;  %v247_v30 = vld [vmem:[%s2387_s0 + $0x220] sm:$0xff] }
  0x3e   :  { %420 = vperm.xlu1 %1026, %v210_v31   ;;  %415 = vperm.xlu0 %1025, %v209_v32  }
  0x42   :  { %430 = vperm.xlu1 %1026, %v212_v33   ;;  %425 = vperm.xlu0 %1025, %v211_v34  }
  0x46   :  { %440 = vperm.xlu1 %1026, %v214_v35   ;;  %435 = vperm.xlu0 %1025, %v213_v36  }
  0x4a   :  { %450 = vperm.xlu1 %1026, %v216_v37   ;;  %445 = vperm.xlu0 %1025, %v215_v38   ;;  %v25_v37 = vld [vmem:[%s2388_s1 + $0x70] sm:$0xff]  ;;  %v26_v38 = vld [vmem:[%s2388_s1 + $0x78] sm:$0xff] }
  0x4e   :  { %460 = vperm.xlu1 %1026, %v218_v39   ;;  %455 = vperm.xlu0 %1025, %v217_v40   ;;  %v23_v39 = vld [vmem:[%s2388_s1 + $0x60] sm:$0xff]  ;;  %v24_v40 = vld [vmem:[%s2388_s1 + $0x68] sm:$0xff] }
  0x52   :  { %470 = vperm.xlu1 %1026, %v220_v41   ;;  %465 = vperm.xlu0 %1025, %v219_v42   ;;  %v250_v41 = vld [vmem:[%s2387_s0 + $0x238] sm:$0xff]  ;;  %v249_v42 = vld [vmem:[%s2387_s0 + $0x230] sm:$0xff] }
  0x56   :  { %480 = vperm.xlu1 %1026, %v222_v43   ;;  %475 = vperm.xlu0 %1025, %v221_v44  }
  0x5a   :  { %490 = vperm.xlu1 %1026, %v224_v45   ;;  %485 = vperm.xlu0 %1025, %v223_v46  }
  0x5e   :  { %500 = vperm.xlu1 %1026, %v226_v47   ;;  %495 = vperm.xlu0 %1025, %v225_v48  }
  0x62   :  { %510 = vperm.xlu1 %1026, %v228_v49   ;;  %505 = vperm.xlu0 %1025, %v227_v50   ;;  %v29_v49 = vld [vmem:[%s2388_s1 + $0x90] sm:$0xff]  ;;  %v30_v50 = vld [vmem:[%s2388_s1 + $0x98] sm:$0xff] }
  0x66   :  { %520 = vperm.xlu1 %1026, %v230_v51   ;;  %515 = vperm.xlu0 %1025, %v229_v52   ;;  %v27_v51 = vld [vmem:[%s2388_s1 + $0x80] sm:$0xff]  ;;  %v28_v52 = vld [vmem:[%s2388_s1 + $0x88] sm:$0xff] }
  0x6a   :  { %530 = vperm.xlu1 %1026, %v232_v53   ;;  %525 = vperm.xlu0 %1025, %v231_v54   ;;  %v252_v53 = vld [vmem:[%s2387_s0 + $0x248] sm:$0xff]  ;;  %v251_v54 = vld [vmem:[%s2387_s0 + $0x240] sm:$0xff] }
  0x6e   :  { %540 = vperm.xlu1 %1026, %v234_v55   ;;  %535 = vperm.xlu0 %1025, %v233_v56  }
  0x72   :  { %550 = vperm.xlu1 %1026, %v236_v57   ;;  %545 = vperm.xlu0 %1025, %v235_v58  }
  0x76   :  { %560 = vperm.xlu1 %1026, %v238_v59   ;;  %555 = vperm.xlu0 %1025, %v237_v60  }
  0x7a   :  { %570 = vperm.xlu1 %1026, %v240_v61   ;;  %565 = vperm.xlu0 %1025, %v239_v62   ;;  %v33_v61 = vld [vmem:[%s2388_s1 + $0xb0] sm:$0xff]  ;;  %v34_v62 = vld [vmem:[%s2388_s1 + $0xb8] sm:$0xff] }
  0x7e   :  { %580 = vperm.xlu1 %1026, %v242_v63   ;;  %575 = vperm.xlu0 %1025, %v241_v0   ;;  %v31_v63 = vld [vmem:[%s2388_s1 + $0xa0] sm:$0xff]  ;;  %v32_v0 = vld [vmem:[%s2388_s1 + $0xa8] sm:$0xff] }
  0x81   :  { %v276_v7 = vpop.permute.xlu1 %275  ;;  %v266_v8 = vpop.permute.xlu0 %265 }
  0x82   :  { %v687_v9 = vmul.f32 %v276_v7, %v15_v1  ;;  %v688_v10 = vmul.f32 %v276_v7, %v16_v2  ;;  %v683_v11 = vmul.f32 %v266_v8, %v11_v3  ;;  %v684_v12 = vmul.f32 %v266_v8, %v12_v4  ;;  %590 = vperm.xlu1 %1026, %v244_v5   ;;  %v254_v1 = vld [vmem:[%s2387_s0 + $0x258] sm:$0xff]  ;;  %v253_v2 = vld [vmem:[%s2387_s0 + $0x250] sm:$0xff] }
  0x83   :  { %585 = vperm.xlu0 %1025, %v243_v6  }
  0x84   :  { %856 = vst [vmem:[%s2389_s2 + $0x20] sm:$0xff] %v687_v9  ;;  %857 = vst.msk [vmem:[%s2389_s2 + $0x28] sm:$0xff] %vm852_vm0, %v688_v10  ;;  %v37_v9 = vld [vmem:[%s2388_s1 + $0xd0] sm:$0xff]  ;;  %v38_v10 = vld [vmem:[%s2388_s1 + $0xd8] sm:$0xff] }
  0x85   :  { %851 = vst [vmem:[%s2389_s2] sm:$0xff] %v683_v11  ;;  %853 = vst.msk [vmem:[%s2389_s2 + $0x8] sm:$0xff] %vm852_vm0, %v684_v12  ;;  %v281_v19 = vpop.permute.xlu1 %280  ;;  %v271_v20 = vpop.permute.xlu0 %270  ;;  %v35_v11 = vld [vmem:[%s2388_s1 + $0xc0] sm:$0xff]  ;;  %v36_v12 = vld [vmem:[%s2388_s1 + $0xc8] sm:$0xff] }
  0x86   :  { %v689_v21 = vmul.f32 %v281_v19, %v17_v13  ;;  %v690_v22 = vmul.f32 %v281_v19, %v18_v14  ;;  %v685_v23 = vmul.f32 %v271_v20, %v13_v15  ;;  %v686_v24 = vmul.f32 %v271_v20, %v14_v16  ;;  %600 = vperm.xlu1 %1026, %v246_v17   ;;  %v256_v13 = vld [vmem:[%s2387_s0 + $0x268] sm:$0xff]  ;;  %v255_v14 = vld [vmem:[%s2387_s0 + $0x260] sm:$0xff] }
  0x87   :  { %595 = vperm.xlu0 %1025, %v245_v18  }
  0x88   :  { %858 = vst [vmem:[%s2389_s2 + $0x30] sm:$0xff] %v689_v21  ;;  %859 = vst.msk [vmem:[%s2389_s2 + $0x38] sm:$0xff] %vm852_vm0, %v690_v22  ;;  %v41_v21 = vld [vmem:[%s2388_s1 + $0xf0] sm:$0xff]  ;;  %v42_v22 = vld [vmem:[%s2388_s1 + $0xf8] sm:$0xff] }
  0x89   :  { %854 = vst [vmem:[%s2389_s2 + $0x10] sm:$0xff] %v685_v23  ;;  %855 = vst.msk [vmem:[%s2389_s2 + $0x18] sm:$0xff] %vm852_vm0, %v686_v24  ;;  %v291_v31 = vpop.permute.xlu1 %290  ;;  %v286_v32 = vpop.permute.xlu0 %285  ;;  %v39_v23 = vld [vmem:[%s2388_s1 + $0xe0] sm:$0xff]  ;;  %v40_v24 = vld [vmem:[%s2388_s1 + $0xe8] sm:$0xff] }
  0x8a   :  { %v693_v33 = vmul.f32 %v291_v31, %v21_v25  ;;  %v694_v34 = vmul.f32 %v291_v31, %v22_v26  ;;  %v691_v35 = vmul.f32 %v286_v32, %v19_v27  ;;  %v692_v36 = vmul.f32 %v286_v32, %v20_v28  ;;  %610 = vperm.xlu1 %1026, %v248_v29   ;;  %v258_v25 = vld [vmem:[%s2387_s0 + $0x278] sm:$0xff]  ;;  %v257_v26 = vld [vmem:[%s2387_s0 + $0x270] sm:$0xff] }
  0x8b   :  { %605 = vperm.xlu0 %1025, %v247_v30  }
  0x8c   :  { %862 = vst [vmem:[%s2389_s2 + $0x50] sm:$0xff] %v693_v33  ;;  %863 = vst.msk [vmem:[%s2389_s2 + $0x58] sm:$0xff] %vm852_vm0, %v694_v34  ;;  %v45_v33 = vld [vmem:[%s2388_s1 + $0x110] sm:$0xff]  ;;  %v46_v34 = vld [vmem:[%s2388_s1 + $0x118] sm:$0xff] }
  0x8d   :  { %860 = vst [vmem:[%s2389_s2 + $0x40] sm:$0xff] %v691_v35  ;;  %861 = vst.msk [vmem:[%s2389_s2 + $0x48] sm:$0xff] %vm852_vm0, %v692_v36  ;;  %v301_v43 = vpop.permute.xlu1 %300  ;;  %v296_v44 = vpop.permute.xlu0 %295  ;;  %v43_v35 = vld [vmem:[%s2388_s1 + $0x100] sm:$0xff]  ;;  %v44_v36 = vld [vmem:[%s2388_s1 + $0x108] sm:$0xff] }
  0x8e   :  { %v697_v45 = vmul.f32 %v301_v43, %v25_v37  ;;  %v698_v46 = vmul.f32 %v301_v43, %v26_v38  ;;  %v695_v47 = vmul.f32 %v296_v44, %v23_v39  ;;  %v696_v48 = vmul.f32 %v296_v44, %v24_v40  ;;  %620 = vperm.xlu1 %1026, %v250_v41   ;;  %v260_v37 = vld [vmem:[%s2387_s0 + $0x288] sm:$0xff]  ;;  %v259_v38 = vld [vmem:[%s2387_s0 + $0x280] sm:$0xff] }
  0x8f   :  { %615 = vperm.xlu0 %1025, %v249_v42  }
  0x90   :  { %866 = vst [vmem:[%s2389_s2 + $0x70] sm:$0xff] %v697_v45  ;;  %867 = vst.msk [vmem:[%s2389_s2 + $0x78] sm:$0xff] %vm852_vm0, %v698_v46  ;;  %v49_v45 = vld [vmem:[%s2388_s1 + $0x130] sm:$0xff]  ;;  %v50_v46 = vld [vmem:[%s2388_s1 + $0x138] sm:$0xff] }
  0x91   :  { %864 = vst [vmem:[%s2389_s2 + $0x60] sm:$0xff] %v695_v47  ;;  %865 = vst.msk [vmem:[%s2389_s2 + $0x68] sm:$0xff] %vm852_vm0, %v696_v48  ;;  %v311_v55 = vpop.permute.xlu1 %310  ;;  %v306_v56 = vpop.permute.xlu0 %305  ;;  %v47_v47 = vld [vmem:[%s2388_s1 + $0x120] sm:$0xff]  ;;  %v48_v48 = vld [vmem:[%s2388_s1 + $0x128] sm:$0xff] }
  0x92   :  { %v701_v57 = vmul.f32 %v311_v55, %v29_v49  ;;  %v702_v58 = vmul.f32 %v311_v55, %v30_v50  ;;  %v699_v59 = vmul.f32 %v306_v56, %v27_v51  ;;  %v700_v60 = vmul.f32 %v306_v56, %v28_v52  ;;  %630 = vperm.xlu1 %1026, %v252_v53   ;;  %v262_v49 = vld [vmem:[%s2387_s0 + $0x298] sm:$0xff]  ;;  %v261_v50 = vld [vmem:[%s2387_s0 + $0x290] sm:$0xff] }
  0x93   :  { %625 = vperm.xlu0 %1025, %v251_v54  }
  0x94   :  { %870 = vst [vmem:[%s2389_s2 + $0x90] sm:$0xff] %v701_v57  ;;  %871 = vst.msk [vmem:[%s2389_s2 + $0x98] sm:$0xff] %vm852_vm0, %v702_v58  ;;  %v53_v57 = vld [vmem:[%s2388_s1 + $0x150] sm:$0xff]  ;;  %v54_v58 = vld [vmem:[%s2388_s1 + $0x158] sm:$0xff] }
  0x95   :  { %868 = vst [vmem:[%s2389_s2 + $0x80] sm:$0xff] %v699_v59  ;;  %869 = vst.msk [vmem:[%s2389_s2 + $0x88] sm:$0xff] %vm852_vm0, %v700_v60  ;;  %v321_v3 = vpop.permute.xlu1 %320  ;;  %v316_v4 = vpop.permute.xlu0 %315  ;;  %v51_v59 = vld [vmem:[%s2388_s1 + $0x140] sm:$0xff]  ;;  %v52_v60 = vld [vmem:[%s2388_s1 + $0x148] sm:$0xff] }
  0x96   :  { %v705_v5 = vmul.f32 %v321_v3, %v33_v61  ;;  %v706_v6 = vmul.f32 %v321_v3, %v34_v62  ;;  %v703_v7 = vmul.f32 %v316_v4, %v31_v63  ;;  %v704_v8 = vmul.f32 %v316_v4, %v32_v0  ;;  %640 = vperm.xlu1 %1026, %v254_v1   ;;  %v57_v3 = vld [vmem:[%s2388_s1 + $0x170] sm:$0xff]  ;;  %v58_v4 = vld [vmem:[%s2388_s1 + $0x178] sm:$0xff] }
  0x97   :  { %635 = vperm.xlu0 %1025, %v253_v2  }
  0x98   :  { %874 = vst [vmem:[%s2389_s2 + $0xb0] sm:$0xff] %v705_v5  ;;  %875 = vst.msk [vmem:[%s2389_s2 + $0xb8] sm:$0xff] %vm852_vm0, %v706_v6  ;;  %v55_v5 = vld [vmem:[%s2388_s1 + $0x160] sm:$0xff]  ;;  %v56_v6 = vld [vmem:[%s2388_s1 + $0x168] sm:$0xff] }
  0x99   :  { %872 = vst [vmem:[%s2389_s2 + $0xa0] sm:$0xff] %v703_v7  ;;  %873 = vst.msk [vmem:[%s2389_s2 + $0xa8] sm:$0xff] %vm852_vm0, %v704_v8  ;;  %v331_v15 = vpop.permute.xlu1 %330  ;;  %v326_v16 = vpop.permute.xlu0 %325 }
  0x9a   :  { %v709_v17 = vmul.f32 %v331_v15, %v37_v9  ;;  %v710_v18 = vmul.f32 %v331_v15, %v38_v10  ;;  %v707_v19 = vmul.f32 %v326_v16, %v35_v11  ;;  %v708_v20 = vmul.f32 %v326_v16, %v36_v12  ;;  %650 = vperm.xlu1 %1026, %v256_v13   ;;  %v61_v13 = vld [vmem:[%s2388_s1 + $0x190] sm:$0xff]  ;;  %v59_v15 = vld [vmem:[%s2388_s1 + $0x180] sm:$0xff]  ;;  %v60_v16 = vld [vmem:[%s2388_s1 + $0x188] sm:$0xff] }
  0x9b   :  { %645 = vperm.xlu0 %1025, %v255_v14   ;;  %v62_v14 = vld [vmem:[%s2388_s1 + $0x198] sm:$0xff] }
  0x9c   :  { %878 = vst [vmem:[%s2389_s2 + $0xd0] sm:$0xff] %v709_v17  ;;  %879 = vst.msk [vmem:[%s2389_s2 + $0xd8] sm:$0xff] %vm852_vm0, %v710_v18 }
  0x9d   :  { %876 = vst [vmem:[%s2389_s2 + $0xc0] sm:$0xff] %v707_v19  ;;  %877 = vst.msk [vmem:[%s2389_s2 + $0xc8] sm:$0xff] %vm852_vm0, %v708_v20  ;;  %v341_v27 = vpop.permute.xlu1 %340  ;;  %v336_v28 = vpop.permute.xlu0 %335 }
  0x9e   :  { %v713_v29 = vmul.f32 %v341_v27, %v41_v21  ;;  %v714_v30 = vmul.f32 %v341_v27, %v42_v22  ;;  %v711_v31 = vmul.f32 %v336_v28, %v39_v23  ;;  %v712_v32 = vmul.f32 %v336_v28, %v40_v24  ;;  %660 = vperm.xlu1 %1026, %v258_v25   ;;  %v65_v23 = vld [vmem:[%s2388_s1 + $0x1b0] sm:$0xff]  ;;  %v66_v24 = vld [vmem:[%s2388_s1 + $0x1b8] sm:$0xff]  ;;  %v63_v25 = vld [vmem:[%s2388_s1 + $0x1a0] sm:$0xff] }
  0x9f   :  { %655 = vperm.xlu0 %1025, %v257_v26   ;;  %v64_v26 = vld [vmem:[%s2388_s1 + $0x1a8] sm:$0xff] }
  0xa0   :  { %882 = vst [vmem:[%s2389_s2 + $0xf0] sm:$0xff] %v713_v29  ;;  %883 = vst.msk [vmem:[%s2389_s2 + $0xf8] sm:$0xff] %vm852_vm0, %v714_v30 }
  0xa1   :  { %880 = vst [vmem:[%s2389_s2 + $0xe0] sm:$0xff] %v711_v31  ;;  %881 = vst.msk [vmem:[%s2389_s2 + $0xe8] sm:$0xff] %vm852_vm0, %v712_v32  ;;  %v351_v39 = vpop.permute.xlu1 %350  ;;  %v346_v40 = vpop.permute.xlu0 %345 }
  0xa2   :  { %v717_v41 = vmul.f32 %v351_v39, %v45_v33  ;;  %v718_v42 = vmul.f32 %v351_v39, %v46_v34  ;;  %v715_v43 = vmul.f32 %v346_v40, %v43_v35  ;;  %v716_v44 = vmul.f32 %v346_v40, %v44_v36  ;;  %670 = vperm.xlu1 %1026, %v260_v37   ;;  %v69_v33 = vld [vmem:[%s2388_s1 + $0x1d0] sm:$0xff]  ;;  %v70_v34 = vld [vmem:[%s2388_s1 + $0x1d8] sm:$0xff]  ;;  %v67_v35 = vld [vmem:[%s2388_s1 + $0x1c0] sm:$0xff] }
  0xa3   :  { %665 = vperm.xlu0 %1025, %v259_v38   ;;  %v68_v36 = vld [vmem:[%s2388_s1 + $0x1c8] sm:$0xff] }
  0xa4   :  { %886 = vst [vmem:[%s2389_s2 + $0x110] sm:$0xff] %v717_v41  ;;  %887 = vst.msk [vmem:[%s2389_s2 + $0x118] sm:$0xff] %vm852_vm0, %v718_v42 }
  0xa5   :  { %884 = vst [vmem:[%s2389_s2 + $0x100] sm:$0xff] %v715_v43  ;;  %885 = vst.msk [vmem:[%s2389_s2 + $0x108] sm:$0xff] %vm852_vm0, %v716_v44  ;;  %v361_v51 = vpop.permute.xlu1 %360  ;;  %v356_v52 = vpop.permute.xlu0 %355  ;;  %v73_v43 = vld [vmem:[%s2388_s1 + $0x1f0] sm:$0xff]  ;;  %v74_v44 = vld [vmem:[%s2388_s1 + $0x1f8] sm:$0xff] }
  0xa6   :  { %v721_v53 = vmul.f32 %v361_v51, %v49_v45  ;;  %v722_v54 = vmul.f32 %v361_v51, %v50_v46  ;;  %v719_v55 = vmul.f32 %v356_v52, %v47_v47  ;;  %v720_v56 = vmul.f32 %v356_v52, %v48_v48  ;;  %680 = vperm.xlu1 %1026, %v262_v49   ;;  %v71_v45 = vld [vmem:[%s2388_s1 + $0x1e0] sm:$0xff]  ;;  %v72_v46 = vld [vmem:[%s2388_s1 + $0x1e8] sm:$0xff] }
  0xa7   :  { %675 = vperm.xlu0 %1025, %v261_v50  }
  0xa8   :  { %890 = vst [vmem:[%s2389_s2 + $0x130] sm:$0xff] %v721_v53  ;;  %891 = vst.msk [vmem:[%s2389_s2 + $0x138] sm:$0xff] %vm852_vm0, %v722_v54  ;;  %v77_v53 = vld [vmem:[%s2388_s1 + $0x210] sm:$0xff]  ;;  %v78_v54 = vld [vmem:[%s2388_s1 + $0x218] sm:$0xff] }
  0xa9   :  { %888 = vst [vmem:[%s2389_s2 + $0x120] sm:$0xff] %v719_v55  ;;  %889 = vst.msk [vmem:[%s2389_s2 + $0x128] sm:$0xff] %vm852_vm0, %v720_v56  ;;  %v371_v61 = vpop.permute.xlu1 %370  ;;  %v366_v62 = vpop.permute.xlu0 %365  ;;  %v75_v55 = vld [vmem:[%s2388_s1 + $0x200] sm:$0xff]  ;;  %v76_v56 = vld [vmem:[%s2388_s1 + $0x208] sm:$0xff] }
  0xaa   :  { %v725_v63 = vmul.f32 %v371_v61, %v53_v57  ;;  %v726_v0 = vmul.f32 %v371_v61, %v54_v58  ;;  %v723_v1 = vmul.f32 %v366_v62, %v51_v59  ;;  %v724_v2 = vmul.f32 %v366_v62, %v52_v60 }
  0xac   :  { %894 = vst [vmem:[%s2389_s2 + $0x150] sm:$0xff] %v725_v63  ;;  %895 = vst.msk [vmem:[%s2389_s2 + $0x158] sm:$0xff] %vm852_vm0, %v726_v0  ;;  %v81_v63 = vld [vmem:[%s2388_s1 + $0x230] sm:$0xff]  ;;  %v82_v0 = vld [vmem:[%s2388_s1 + $0x238] sm:$0xff] }
  0xad   :  { %892 = vst [vmem:[%s2389_s2 + $0x140] sm:$0xff] %v723_v1  ;;  %893 = vst.msk [vmem:[%s2389_s2 + $0x148] sm:$0xff] %vm852_vm0, %v724_v2  ;;  %v381_v7 = vpop.permute.xlu1 %380  ;;  %v376_v8 = vpop.permute.xlu0 %375  ;;  %v79_v1 = vld [vmem:[%s2388_s1 + $0x220] sm:$0xff]  ;;  %v80_v2 = vld [vmem:[%s2388_s1 + $0x228] sm:$0xff] }
  0xae   :  { %v729_v9 = vmul.f32 %v381_v7, %v57_v3  ;;  %v730_v10 = vmul.f32 %v381_v7, %v58_v4  ;;  %v727_v11 = vmul.f32 %v376_v8, %v55_v5  ;;  %v728_v12 = vmul.f32 %v376_v8, %v56_v6 }
  0xb0   :  { %898 = vst [vmem:[%s2389_s2 + $0x170] sm:$0xff] %v729_v9  ;;  %899 = vst.msk [vmem:[%s2389_s2 + $0x178] sm:$0xff] %vm852_vm0, %v730_v10  ;;  %v85_v9 = vld [vmem:[%s2388_s1 + $0x250] sm:$0xff]  ;;  %v86_v10 = vld [vmem:[%s2388_s1 + $0x258] sm:$0xff] }
  0xb1   :  { %896 = vst [vmem:[%s2389_s2 + $0x160] sm:$0xff] %v727_v11  ;;  %897 = vst.msk [vmem:[%s2389_s2 + $0x168] sm:$0xff] %vm852_vm0, %v728_v12  ;;  %v391_v17 = vpop.permute.xlu1 %390  ;;  %v386_v18 = vpop.permute.xlu0 %385  ;;  %v83_v11 = vld [vmem:[%s2388_s1 + $0x240] sm:$0xff]  ;;  %v84_v12 = vld [vmem:[%s2388_s1 + $0x248] sm:$0xff] }
  0xb2   :  { %v733_v19 = vmul.f32 %v391_v17, %v61_v13  ;;  %v734_v20 = vmul.f32 %v391_v17, %v62_v14  ;;  %v731_v21 = vmul.f32 %v386_v18, %v59_v15  ;;  %v732_v22 = vmul.f32 %v386_v18, %v60_v16 }
  0xb4   :  { %902 = vst [vmem:[%s2389_s2 + $0x190] sm:$0xff] %v733_v19  ;;  %903 = vst.msk [vmem:[%s2389_s2 + $0x198] sm:$0xff] %vm852_vm0, %v734_v20  ;;  %v89_v19 = vld [vmem:[%s2388_s1 + $0x270] sm:$0xff]  ;;  %v90_v20 = vld [vmem:[%s2388_s1 + $0x278] sm:$0xff] }
  0xb5   :  { %900 = vst [vmem:[%s2389_s2 + $0x180] sm:$0xff] %v731_v21  ;;  %901 = vst.msk [vmem:[%s2389_s2 + $0x188] sm:$0xff] %vm852_vm0, %v732_v22  ;;  %v401_v27 = vpop.permute.xlu1 %400  ;;  %v396_v28 = vpop.permute.xlu0 %395  ;;  %v87_v21 = vld [vmem:[%s2388_s1 + $0x260] sm:$0xff]  ;;  %v88_v22 = vld [vmem:[%s2388_s1 + $0x268] sm:$0xff] }
  0xb6   :  { %v737_v29 = vmul.f32 %v401_v27, %v65_v23  ;;  %v738_v30 = vmul.f32 %v401_v27, %v66_v24  ;;  %v735_v31 = vmul.f32 %v396_v28, %v63_v25  ;;  %v736_v32 = vmul.f32 %v396_v28, %v64_v26 }
  0xb8   :  { %906 = vst [vmem:[%s2389_s2 + $0x1b0] sm:$0xff] %v737_v29  ;;  %907 = vst.msk [vmem:[%s2389_s2 + $0x1b8] sm:$0xff] %vm852_vm0, %v738_v30  ;;  %v93_v29 = vld [vmem:[%s2388_s1 + $0x290] sm:$0xff]  ;;  %v94_v30 = vld [vmem:[%s2388_s1 + $0x298] sm:$0xff] }
  0xb9   :  { %904 = vst [vmem:[%s2389_s2 + $0x1a0] sm:$0xff] %v735_v31  ;;  %905 = vst.msk [vmem:[%s2389_s2 + $0x1a8] sm:$0xff] %vm852_vm0, %v736_v32  ;;  %v411_v37 = vpop.permute.xlu1 %410  ;;  %v406_v38 = vpop.permute.xlu0 %405  ;;  %v91_v31 = vld [vmem:[%s2388_s1 + $0x280] sm:$0xff]  ;;  %v92_v32 = vld [vmem:[%s2388_s1 + $0x288] sm:$0xff] }
  0xba   :  { %v741_v39 = vmul.f32 %v411_v37, %v69_v33  ;;  %v742_v40 = vmul.f32 %v411_v37, %v70_v34  ;;  %v739_v41 = vmul.f32 %v406_v38, %v67_v35  ;;  %v740_v42 = vmul.f32 %v406_v38, %v68_v36 }
  0xbc   :  { %910 = vst [vmem:[%s2389_s2 + $0x1d0] sm:$0xff] %v741_v39  ;;  %911 = vst.msk [vmem:[%s2389_s2 + $0x1d8] sm:$0xff] %vm852_vm0, %v742_v40  ;;  %v97_v39 = vld [vmem:[%s2388_s1 + $0x2b0] sm:$0xff]  ;;  %v98_v40 = vld [vmem:[%s2388_s1 + $0x2b8] sm:$0xff] }
  0xbd   :  { %908 = vst [vmem:[%s2389_s2 + $0x1c0] sm:$0xff] %v739_v41  ;;  %909 = vst.msk [vmem:[%s2389_s2 + $0x1c8] sm:$0xff] %vm852_vm0, %v740_v42  ;;  %v421_v47 = vpop.permute.xlu1 %420  ;;  %v416_v48 = vpop.permute.xlu0 %415  ;;  %v95_v41 = vld [vmem:[%s2388_s1 + $0x2a0] sm:$0xff]  ;;  %v96_v42 = vld [vmem:[%s2388_s1 + $0x2a8] sm:$0xff] }
  0xbe   :  { %v745_v49 = vmul.f32 %v421_v47, %v73_v43  ;;  %v746_v50 = vmul.f32 %v421_v47, %v74_v44  ;;  %v743_v51 = vmul.f32 %v416_v48, %v71_v45  ;;  %v744_v52 = vmul.f32 %v416_v48, %v72_v46 }
  0xc0   :  { %914 = vst [vmem:[%s2389_s2 + $0x1f0] sm:$0xff] %v745_v49  ;;  %915 = vst.msk [vmem:[%s2389_s2 + $0x1f8] sm:$0xff] %vm852_vm0, %v746_v50  ;;  %v101_v49 = vld [vmem:[%s2388_s1 + $0x2d0] sm:$0xff]  ;;  %v102_v50 = vld [vmem:[%s2388_s1 + $0x2d8] sm:$0xff] }
  0xc1   :  { %912 = vst [vmem:[%s2389_s2 + $0x1e0] sm:$0xff] %v743_v51  ;;  %913 = vst.msk [vmem:[%s2389_s2 + $0x1e8] sm:$0xff] %vm852_vm0, %v744_v52  ;;  %v431_v57 = vpop.permute.xlu1 %430  ;;  %v426_v58 = vpop.permute.xlu0 %425  ;;  %v99_v51 = vld [vmem:[%s2388_s1 + $0x2c0] sm:$0xff]  ;;  %v100_v52 = vld [vmem:[%s2388_s1 + $0x2c8] sm:$0xff] }
  0xc2   :  { %v749_v59 = vmul.f32 %v431_v57, %v77_v53  ;;  %v750_v60 = vmul.f32 %v431_v57, %v78_v54  ;;  %v747_v61 = vmul.f32 %v426_v58, %v75_v55  ;;  %v748_v62 = vmul.f32 %v426_v58, %v76_v56 }
  0xc4   :  { %918 = vst [vmem:[%s2389_s2 + $0x210] sm:$0xff] %v749_v59  ;;  %919 = vst.msk [vmem:[%s2389_s2 + $0x218] sm:$0xff] %vm852_vm0, %v750_v60  ;;  %v105_v59 = vld [vmem:[%s2388_s1 + $0x2f0] sm:$0xff]  ;;  %v106_v60 = vld [vmem:[%s2388_s1 + $0x2f8] sm:$0xff] }
  0xc5   :  { %916 = vst [vmem:[%s2389_s2 + $0x200] sm:$0xff] %v747_v61  ;;  %917 = vst.msk [vmem:[%s2389_s2 + $0x208] sm:$0xff] %vm852_vm0, %v748_v62  ;;  %v441_v3 = vpop.permute.xlu1 %440  ;;  %v436_v4 = vpop.permute.xlu0 %435  ;;  %v103_v61 = vld [vmem:[%s2388_s1 + $0x2e0] sm:$0xff]  ;;  %v104_v62 = vld [vmem:[%s2388_s1 + $0x2e8] sm:$0xff] }
  0xc6   :  { %v753_v5 = vmul.f32 %v441_v3, %v81_v63  ;;  %v754_v6 = vmul.f32 %v441_v3, %v82_v0  ;;  %v751_v7 = vmul.f32 %v436_v4, %v79_v1  ;;  %v752_v8 = vmul.f32 %v436_v4, %v80_v2 }
  0xc8   :  { %922 = vst [vmem:[%s2389_s2 + $0x230] sm:$0xff] %v753_v5  ;;  %923 = vst.msk [vmem:[%s2389_s2 + $0x238] sm:$0xff] %vm852_vm0, %v754_v6  ;;  %v109_v5 = vld [vmem:[%s2388_s1 + $0x310] sm:$0xff]  ;;  %v110_v6 = vld [vmem:[%s2388_s1 + $0x318] sm:$0xff] }
  0xc9   :  { %920 = vst [vmem:[%s2389_s2 + $0x220] sm:$0xff] %v751_v7  ;;  %921 = vst.msk [vmem:[%s2389_s2 + $0x228] sm:$0xff] %vm852_vm0, %v752_v8  ;;  %v451_v13 = vpop.permute.xlu1 %450  ;;  %v446_v14 = vpop.permute.xlu0 %445  ;;  %v107_v7 = vld [vmem:[%s2388_s1 + $0x300] sm:$0xff]  ;;  %v108_v8 = vld [vmem:[%s2388_s1 + $0x308] sm:$0xff] }
  0xca   :  { %v757_v15 = vmul.f32 %v451_v13, %v85_v9  ;;  %v758_v16 = vmul.f32 %v451_v13, %v86_v10  ;;  %v755_v17 = vmul.f32 %v446_v14, %v83_v11  ;;  %v756_v18 = vmul.f32 %v446_v14, %v84_v12 }
  0xcc   :  { %926 = vst [vmem:[%s2389_s2 + $0x250] sm:$0xff] %v757_v15  ;;  %927 = vst.msk [vmem:[%s2389_s2 + $0x258] sm:$0xff] %vm852_vm0, %v758_v16  ;;  %v113_v15 = vld [vmem:[%s2388_s1 + $0x330] sm:$0xff]  ;;  %v114_v16 = vld [vmem:[%s2388_s1 + $0x338] sm:$0xff] }
  0xcd   :  { %924 = vst [vmem:[%s2389_s2 + $0x240] sm:$0xff] %v755_v17  ;;  %925 = vst.msk [vmem:[%s2389_s2 + $0x248] sm:$0xff] %vm852_vm0, %v756_v18  ;;  %v461_v23 = vpop.permute.xlu1 %460  ;;  %v456_v24 = vpop.permute.xlu0 %455  ;;  %v111_v17 = vld [vmem:[%s2388_s1 + $0x320] sm:$0xff]  ;;  %v112_v18 = vld [vmem:[%s2388_s1 + $0x328] sm:$0xff] }
  0xce   :  { %v761_v25 = vmul.f32 %v461_v23, %v89_v19  ;;  %v762_v26 = vmul.f32 %v461_v23, %v90_v20  ;;  %v759_v27 = vmul.f32 %v456_v24, %v87_v21  ;;  %v760_v28 = vmul.f32 %v456_v24, %v88_v22 }
  0xd0   :  { %930 = vst [vmem:[%s2389_s2 + $0x270] sm:$0xff] %v761_v25  ;;  %931 = vst.msk [vmem:[%s2389_s2 + $0x278] sm:$0xff] %vm852_vm0, %v762_v26  ;;  %v117_v25 = vld [vmem:[%s2388_s1 + $0x350] sm:$0xff]  ;;  %v118_v26 = vld [vmem:[%s2388_s1 + $0x358] sm:$0xff] }
  0xd1   :  { %928 = vst [vmem:[%s2389_s2 + $0x260] sm:$0xff] %v759_v27  ;;  %929 = vst.msk [vmem:[%s2389_s2 + $0x268] sm:$0xff] %vm852_vm0, %v760_v28  ;;  %v471_v33 = vpop.permute.xlu1 %470  ;;  %v466_v34 = vpop.permute.xlu0 %465  ;;  %v115_v27 = vld [vmem:[%s2388_s1 + $0x340] sm:$0xff]  ;;  %v116_v28 = vld [vmem:[%s2388_s1 + $0x348] sm:$0xff] }
  0xd2   :  { %v765_v35 = vmul.f32 %v471_v33, %v93_v29  ;;  %v766_v36 = vmul.f32 %v471_v33, %v94_v30  ;;  %v763_v37 = vmul.f32 %v466_v34, %v91_v31  ;;  %v764_v38 = vmul.f32 %v466_v34, %v92_v32 }
  0xd4   :  { %934 = vst [vmem:[%s2389_s2 + $0x290] sm:$0xff] %v765_v35  ;;  %935 = vst.msk [vmem:[%s2389_s2 + $0x298] sm:$0xff] %vm852_vm0, %v766_v36  ;;  %v121_v35 = vld [vmem:[%s2388_s1 + $0x370] sm:$0xff]  ;;  %v122_v36 = vld [vmem:[%s2388_s1 + $0x378] sm:$0xff] }
  0xd5   :  { %932 = vst [vmem:[%s2389_s2 + $0x280] sm:$0xff] %v763_v37  ;;  %933 = vst.msk [vmem:[%s2389_s2 + $0x288] sm:$0xff] %vm852_vm0, %v764_v38  ;;  %v481_v43 = vpop.permute.xlu1 %480  ;;  %v476_v44 = vpop.permute.xlu0 %475  ;;  %v119_v37 = vld [vmem:[%s2388_s1 + $0x360] sm:$0xff]  ;;  %v120_v38 = vld [vmem:[%s2388_s1 + $0x368] sm:$0xff] }
  0xd6   :  { %v769_v45 = vmul.f32 %v481_v43, %v97_v39  ;;  %v770_v46 = vmul.f32 %v481_v43, %v98_v40  ;;  %v767_v47 = vmul.f32 %v476_v44, %v95_v41  ;;  %v768_v48 = vmul.f32 %v476_v44, %v96_v42 }
  0xd8   :  { %938 = vst [vmem:[%s2389_s2 + $0x2b0] sm:$0xff] %v769_v45  ;;  %939 = vst.msk [vmem:[%s2389_s2 + $0x2b8] sm:$0xff] %vm852_vm0, %v770_v46  ;;  %v125_v45 = vld [vmem:[%s2388_s1 + $0x390] sm:$0xff]  ;;  %v126_v46 = vld [vmem:[%s2388_s1 + $0x398] sm:$0xff] }
  0xd9   :  { %936 = vst [vmem:[%s2389_s2 + $0x2a0] sm:$0xff] %v767_v47  ;;  %937 = vst.msk [vmem:[%s2389_s2 + $0x2a8] sm:$0xff] %vm852_vm0, %v768_v48  ;;  %v491_v53 = vpop.permute.xlu1 %490  ;;  %v486_v54 = vpop.permute.xlu0 %485  ;;  %v123_v47 = vld [vmem:[%s2388_s1 + $0x380] sm:$0xff]  ;;  %v124_v48 = vld [vmem:[%s2388_s1 + $0x388] sm:$0xff] }
  0xda   :  { %v773_v55 = vmul.f32 %v491_v53, %v101_v49  ;;  %v774_v56 = vmul.f32 %v491_v53, %v102_v50  ;;  %v771_v57 = vmul.f32 %v486_v54, %v99_v51  ;;  %v772_v58 = vmul.f32 %v486_v54, %v100_v52 }
  0xdc   :  { %942 = vst [vmem:[%s2389_s2 + $0x2d0] sm:$0xff] %v773_v55  ;;  %943 = vst.msk [vmem:[%s2389_s2 + $0x2d8] sm:$0xff] %vm852_vm0, %v774_v56  ;;  %v129_v55 = vld [vmem:[%s2388_s1 + $0x3b0] sm:$0xff]  ;;  %v130_v56 = vld [vmem:[%s2388_s1 + $0x3b8] sm:$0xff] }
  0xdd   :  { %940 = vst [vmem:[%s2389_s2 + $0x2c0] sm:$0xff] %v771_v57  ;;  %941 = vst.msk [vmem:[%s2389_s2 + $0x2c8] sm:$0xff] %vm852_vm0, %v772_v58  ;;  %v501_v63 = vpop.permute.xlu1 %500  ;;  %v496_v0 = vpop.permute.xlu0 %495  ;;  %v127_v57 = vld [vmem:[%s2388_s1 + $0x3a0] sm:$0xff]  ;;  %v128_v58 = vld [vmem:[%s2388_s1 + $0x3a8] sm:$0xff] }
  0xde   :  { %v777_v1 = vmul.f32 %v501_v63, %v105_v59  ;;  %v778_v2 = vmul.f32 %v501_v63, %v106_v60  ;;  %v775_v3 = vmul.f32 %v496_v0, %v103_v61  ;;  %v776_v4 = vmul.f32 %v496_v0, %v104_v62 }
  0xe0   :  { %946 = vst [vmem:[%s2389_s2 + $0x2f0] sm:$0xff] %v777_v1  ;;  %947 = vst.msk [vmem:[%s2389_s2 + $0x2f8] sm:$0xff] %vm852_vm0, %v778_v2  ;;  %v133_v1 = vld [vmem:[%s2388_s1 + $0x3d0] sm:$0xff]  ;;  %v134_v2 = vld [vmem:[%s2388_s1 + $0x3d8] sm:$0xff] }
  0xe1   :  { %944 = vst [vmem:[%s2389_s2 + $0x2e0] sm:$0xff] %v775_v3  ;;  %945 = vst.msk [vmem:[%s2389_s2 + $0x2e8] sm:$0xff] %vm852_vm0, %v776_v4  ;;  %v511_v9 = vpop.permute.xlu1 %510  ;;  %v506_v10 = vpop.permute.xlu0 %505  ;;  %v131_v3 = vld [vmem:[%s2388_s1 + $0x3c0] sm:$0xff]  ;;  %v132_v4 = vld [vmem:[%s2388_s1 + $0x3c8] sm:$0xff] }
  0xe2   :  { %v781_v11 = vmul.f32 %v511_v9, %v109_v5  ;;  %v782_v12 = vmul.f32 %v511_v9, %v110_v6  ;;  %v779_v13 = vmul.f32 %v506_v10, %v107_v7  ;;  %v780_v14 = vmul.f32 %v506_v10, %v108_v8 }
  0xe4   :  { %950 = vst [vmem:[%s2389_s2 + $0x310] sm:$0xff] %v781_v11  ;;  %951 = vst.msk [vmem:[%s2389_s2 + $0x318] sm:$0xff] %vm852_vm0, %v782_v12  ;;  %v137_v11 = vld [vmem:[%s2388_s1 + $0x3f0] sm:$0xff]  ;;  %v138_v12 = vld [vmem:[%s2388_s1 + $0x3f8] sm:$0xff] }
  0xe5   :  { %948 = vst [vmem:[%s2389_s2 + $0x300] sm:$0xff] %v779_v13  ;;  %949 = vst.msk [vmem:[%s2389_s2 + $0x308] sm:$0xff] %vm852_vm0, %v780_v14  ;;  %v521_v19 = vpop.permute.xlu1 %520  ;;  %v516_v20 = vpop.permute.xlu0 %515  ;;  %v135_v13 = vld [vmem:[%s2388_s1 + $0x3e0] sm:$0xff]  ;;  %v136_v14 = vld [vmem:[%s2388_s1 + $0x3e8] sm:$0xff] }
  0xe6   :  { %v785_v21 = vmul.f32 %v521_v19, %v113_v15  ;;  %v786_v22 = vmul.f32 %v521_v19, %v114_v16  ;;  %v783_v23 = vmul.f32 %v516_v20, %v111_v17  ;;  %v784_v24 = vmul.f32 %v516_v20, %v112_v18 }
  0xe8   :  { %954 = vst [vmem:[%s2389_s2 + $0x330] sm:$0xff] %v785_v21  ;;  %955 = vst.msk [vmem:[%s2389_s2 + $0x338] sm:$0xff] %vm852_vm0, %v786_v22  ;;  %v141_v21 = vld [vmem:[%s2388_s1 + $0x410] sm:$0xff]  ;;  %v142_v22 = vld [vmem:[%s2388_s1 + $0x418] sm:$0xff] }
  0xe9   :  { %952 = vst [vmem:[%s2389_s2 + $0x320] sm:$0xff] %v783_v23  ;;  %953 = vst.msk [vmem:[%s2389_s2 + $0x328] sm:$0xff] %vm852_vm0, %v784_v24  ;;  %v531_v29 = vpop.permute.xlu1 %530  ;;  %v526_v30 = vpop.permute.xlu0 %525  ;;  %v139_v23 = vld [vmem:[%s2388_s1 + $0x400] sm:$0xff]  ;;  %v140_v24 = vld [vmem:[%s2388_s1 + $0x408] sm:$0xff] }
  0xea   :  { %v789_v31 = vmul.f32 %v531_v29, %v117_v25  ;;  %v790_v32 = vmul.f32 %v531_v29, %v118_v26  ;;  %v787_v33 = vmul.f32 %v526_v30, %v115_v27  ;;  %v788_v34 = vmul.f32 %v526_v30, %v116_v28 }
  0xec   :  { %958 = vst [vmem:[%s2389_s2 + $0x350] sm:$0xff] %v789_v31  ;;  %959 = vst.msk [vmem:[%s2389_s2 + $0x358] sm:$0xff] %vm852_vm0, %v790_v32  ;;  %v145_v31 = vld [vmem:[%s2388_s1 + $0x430] sm:$0xff]  ;;  %v146_v32 = vld [vmem:[%s2388_s1 + $0x438] sm:$0xff] }
  0xed   :  { %956 = vst [vmem:[%s2389_s2 + $0x340] sm:$0xff] %v787_v33  ;;  %957 = vst.msk [vmem:[%s2389_s2 + $0x348] sm:$0xff] %vm852_vm0, %v788_v34  ;;  %v541_v39 = vpop.permute.xlu1 %540  ;;  %v536_v40 = vpop.permute.xlu0 %535  ;;  %v143_v33 = vld [vmem:[%s2388_s1 + $0x420] sm:$0xff]  ;;  %v144_v34 = vld [vmem:[%s2388_s1 + $0x428] sm:$0xff] }
  0xee   :  { %v793_v41 = vmul.f32 %v541_v39, %v121_v35  ;;  %v794_v42 = vmul.f32 %v541_v39, %v122_v36  ;;  %v791_v43 = vmul.f32 %v536_v40, %v119_v37  ;;  %v792_v44 = vmul.f32 %v536_v40, %v120_v38 }
  0xf0   :  { %962 = vst [vmem:[%s2389_s2 + $0x370] sm:$0xff] %v793_v41  ;;  %963 = vst.msk [vmem:[%s2389_s2 + $0x378] sm:$0xff] %vm852_vm0, %v794_v42  ;;  %v149_v41 = vld [vmem:[%s2388_s1 + $0x450] sm:$0xff]  ;;  %v150_v42 = vld [vmem:[%s2388_s1 + $0x458] sm:$0xff] }
  0xf1   :  { %960 = vst [vmem:[%s2389_s2 + $0x360] sm:$0xff] %v791_v43  ;;  %961 = vst.msk [vmem:[%s2389_s2 + $0x368] sm:$0xff] %vm852_vm0, %v792_v44  ;;  %v551_v49 = vpop.permute.xlu1 %550  ;;  %v546_v50 = vpop.permute.xlu0 %545  ;;  %v147_v43 = vld [vmem:[%s2388_s1 + $0x440] sm:$0xff]  ;;  %v148_v44 = vld [vmem:[%s2388_s1 + $0x448] sm:$0xff] }
  0xf2   :  { %v797_v51 = vmul.f32 %v551_v49, %v125_v45  ;;  %v798_v52 = vmul.f32 %v551_v49, %v126_v46  ;;  %v795_v53 = vmul.f32 %v546_v50, %v123_v47  ;;  %v796_v54 = vmul.f32 %v546_v50, %v124_v48 }
  0xf4   :  { %966 = vst [vmem:[%s2389_s2 + $0x390] sm:$0xff] %v797_v51  ;;  %967 = vst.msk [vmem:[%s2389_s2 + $0x398] sm:$0xff] %vm852_vm0, %v798_v52  ;;  %v153_v51 = vld [vmem:[%s2388_s1 + $0x470] sm:$0xff]  ;;  %v154_v52 = vld [vmem:[%s2388_s1 + $0x478] sm:$0xff] }
  0xf5   :  { %964 = vst [vmem:[%s2389_s2 + $0x380] sm:$0xff] %v795_v53  ;;  %965 = vst.msk [vmem:[%s2389_s2 + $0x388] sm:$0xff] %vm852_vm0, %v796_v54  ;;  %v561_v59 = vpop.permute.xlu1 %560  ;;  %v556_v60 = vpop.permute.xlu0 %555  ;;  %v151_v53 = vld [vmem:[%s2388_s1 + $0x460] sm:$0xff]  ;;  %v152_v54 = vld [vmem:[%s2388_s1 + $0x468] sm:$0xff] }
  0xf6   :  { %v801_v61 = vmul.f32 %v561_v59, %v129_v55  ;;  %v802_v62 = vmul.f32 %v561_v59, %v130_v56  ;;  %v799_v63 = vmul.f32 %v556_v60, %v127_v57  ;;  %v800_v0 = vmul.f32 %v556_v60, %v128_v58 }
  0xf8   :  { %970 = vst [vmem:[%s2389_s2 + $0x3b0] sm:$0xff] %v801_v61  ;;  %971 = vst.msk [vmem:[%s2389_s2 + $0x3b8] sm:$0xff] %vm852_vm0, %v802_v62  ;;  %v157_v61 = vld [vmem:[%s2388_s1 + $0x490] sm:$0xff]  ;;  %v158_v62 = vld [vmem:[%s2388_s1 + $0x498] sm:$0xff] }
  0xf9   :  { %968 = vst [vmem:[%s2389_s2 + $0x3a0] sm:$0xff] %v799_v63  ;;  %969 = vst.msk [vmem:[%s2389_s2 + $0x3a8] sm:$0xff] %vm852_vm0, %v800_v0  ;;  %v571_v5 = vpop.permute.xlu1 %570  ;;  %v566_v6 = vpop.permute.xlu0 %565  ;;  %v155_v63 = vld [vmem:[%s2388_s1 + $0x480] sm:$0xff]  ;;  %v156_v0 = vld [vmem:[%s2388_s1 + $0x488] sm:$0xff] }
  0xfa   :  { %v805_v7 = vmul.f32 %v571_v5, %v133_v1  ;;  %v806_v8 = vmul.f32 %v571_v5, %v134_v2  ;;  %v803_v9 = vmul.f32 %v566_v6, %v131_v3  ;;  %v804_v10 = vmul.f32 %v566_v6, %v132_v4 }
  0xfc   :  { %974 = vst [vmem:[%s2389_s2 + $0x3d0] sm:$0xff] %v805_v7  ;;  %975 = vst.msk [vmem:[%s2389_s2 + $0x3d8] sm:$0xff] %vm852_vm0, %v806_v8  ;;  %v161_v7 = vld [vmem:[%s2388_s1 + $0x4b0] sm:$0xff]  ;;  %v162_v8 = vld [vmem:[%s2388_s1 + $0x4b8] sm:$0xff] }
  0xfd   :  { %972 = vst [vmem:[%s2389_s2 + $0x3c0] sm:$0xff] %v803_v9  ;;  %973 = vst.msk [vmem:[%s2389_s2 + $0x3c8] sm:$0xff] %vm852_vm0, %v804_v10  ;;  %v581_v15 = vpop.permute.xlu1 %580  ;;  %v576_v16 = vpop.permute.xlu0 %575  ;;  %v159_v9 = vld [vmem:[%s2388_s1 + $0x4a0] sm:$0xff]  ;;  %v160_v10 = vld [vmem:[%s2388_s1 + $0x4a8] sm:$0xff] }
  0xfe   :  { %v809_v17 = vmul.f32 %v581_v15, %v137_v11  ;;  %v810_v18 = vmul.f32 %v581_v15, %v138_v12  ;;  %v807_v19 = vmul.f32 %v576_v16, %v135_v13  ;;  %v808_v20 = vmul.f32 %v576_v16, %v136_v14 }
 0x100   :  { %978 = vst [vmem:[%s2389_s2 + $0x3f0] sm:$0xff] %v809_v17  ;;  %979 = vst.msk [vmem:[%s2389_s2 + $0x3f8] sm:$0xff] %vm852_vm0, %v810_v18  ;;  %v165_v17 = vld [vmem:[%s2388_s1 + $0x4d0] sm:$0xff]  ;;  %v166_v18 = vld [vmem:[%s2388_s1 + $0x4d8] sm:$0xff] }
 0x101   :  { %976 = vst [vmem:[%s2389_s2 + $0x3e0] sm:$0xff] %v807_v19  ;;  %977 = vst.msk [vmem:[%s2389_s2 + $0x3e8] sm:$0xff] %vm852_vm0, %v808_v20  ;;  %v591_v25 = vpop.permute.xlu1 %590  ;;  %v163_v19 = vld [vmem:[%s2388_s1 + $0x4c0] sm:$0xff]  ;;  %v164_v20 = vld [vmem:[%s2388_s1 + $0x4c8] sm:$0xff] }
 0x102   :  { %v813_v26 = vmul.f32 %v591_v25, %v141_v21  ;;  %v814_v27 = vmul.f32 %v591_v25, %v142_v22  ;;  %v586_v28 = vpop.permute.xlu0 %585 }
 0x103   :  { %v811_v29 = vmul.f32 %v586_v28, %v139_v23  ;;  %v812_v30 = vmul.f32 %v586_v28, %v140_v24  ;;  %v170_v28 = vld [vmem:[%s2388_s1 + $0x4f8] sm:$0xff] }
 0x104   :  { %982 = vst [vmem:[%s2389_s2 + $0x410] sm:$0xff] %v813_v26  ;;  %983 = vst.msk [vmem:[%s2389_s2 + $0x418] sm:$0xff] %vm852_vm0, %v814_v27  ;;  %v169_v27 = vld [vmem:[%s2388_s1 + $0x4f0] sm:$0xff] }
 0x105   :  { %980 = vst [vmem:[%s2389_s2 + $0x400] sm:$0xff] %v811_v29  ;;  %981 = vst.msk [vmem:[%s2389_s2 + $0x408] sm:$0xff] %vm852_vm0, %v812_v30  ;;  %v601_v35 = vpop.permute.xlu1 %600  ;;  %v167_v29 = vld [vmem:[%s2388_s1 + $0x4e0] sm:$0xff]  ;;  %v168_v30 = vld [vmem:[%s2388_s1 + $0x4e8] sm:$0xff] }
 0x106   :  { %v817_v36 = vmul.f32 %v601_v35, %v145_v31  ;;  %v818_v37 = vmul.f32 %v601_v35, %v146_v32  ;;  %v596_v38 = vpop.permute.xlu0 %595 }
 0x107   :  { %v815_v39 = vmul.f32 %v596_v38, %v143_v33  ;;  %v816_v40 = vmul.f32 %v596_v38, %v144_v34  ;;  %v174_v38 = vld [vmem:[%s2388_s1 + $0x518] sm:$0xff] }
 0x108   :  { %986 = vst [vmem:[%s2389_s2 + $0x430] sm:$0xff] %v817_v36  ;;  %987 = vst.msk [vmem:[%s2389_s2 + $0x438] sm:$0xff] %vm852_vm0, %v818_v37  ;;  %v173_v37 = vld [vmem:[%s2388_s1 + $0x510] sm:$0xff] }
 0x109   :  { %984 = vst [vmem:[%s2389_s2 + $0x420] sm:$0xff] %v815_v39  ;;  %985 = vst.msk [vmem:[%s2389_s2 + $0x428] sm:$0xff] %vm852_vm0, %v816_v40  ;;  %v611_v45 = vpop.permute.xlu1 %610  ;;  %v171_v39 = vld [vmem:[%s2388_s1 + $0x500] sm:$0xff]  ;;  %v172_v40 = vld [vmem:[%s2388_s1 + $0x508] sm:$0xff] }
 0x10a   :  { %v821_v46 = vmul.f32 %v611_v45, %v149_v41  ;;  %v822_v47 = vmul.f32 %v611_v45, %v150_v42  ;;  %v606_v48 = vpop.permute.xlu0 %605 }
 0x10b   :  { %v819_v49 = vmul.f32 %v606_v48, %v147_v43  ;;  %v820_v50 = vmul.f32 %v606_v48, %v148_v44  ;;  %v178_v48 = vld [vmem:[%s2388_s1 + $0x538] sm:$0xff] }
 0x10c   :  { %990 = vst [vmem:[%s2389_s2 + $0x450] sm:$0xff] %v821_v46  ;;  %991 = vst.msk [vmem:[%s2389_s2 + $0x458] sm:$0xff] %vm852_vm0, %v822_v47  ;;  %v177_v47 = vld [vmem:[%s2388_s1 + $0x530] sm:$0xff] }
 0x10d   :  { %988 = vst [vmem:[%s2389_s2 + $0x440] sm:$0xff] %v819_v49  ;;  %989 = vst.msk [vmem:[%s2389_s2 + $0x448] sm:$0xff] %vm852_vm0, %v820_v50  ;;  %v621_v55 = vpop.permute.xlu1 %620  ;;  %v175_v49 = vld [vmem:[%s2388_s1 + $0x520] sm:$0xff]  ;;  %v176_v50 = vld [vmem:[%s2388_s1 + $0x528] sm:$0xff] }
 0x10e   :  { %v825_v56 = vmul.f32 %v621_v55, %v153_v51  ;;  %v826_v57 = vmul.f32 %v621_v55, %v154_v52  ;;  %v616_v58 = vpop.permute.xlu0 %615 }
 0x10f   :  { %v823_v59 = vmul.f32 %v616_v58, %v151_v53  ;;  %v824_v60 = vmul.f32 %v616_v58, %v152_v54 }
 0x110   :  { %994 = vst [vmem:[%s2389_s2 + $0x470] sm:$0xff] %v825_v56  ;;  %995 = vst.msk [vmem:[%s2389_s2 + $0x478] sm:$0xff] %vm852_vm0, %v826_v57 }
 0x111   :  { %992 = vst [vmem:[%s2389_s2 + $0x460] sm:$0xff] %v823_v59  ;;  %993 = vst.msk [vmem:[%s2389_s2 + $0x468] sm:$0xff] %vm852_vm0, %v824_v60  ;;  %v631_v1 = vpop.permute.xlu1 %630 }
 0x112   :  { %v829_v2 = vmul.f32 %v631_v1, %v157_v61  ;;  %v830_v3 = vmul.f32 %v631_v1, %v158_v62  ;;  %v626_v4 = vpop.permute.xlu0 %625 }
 0x113   :  { %v827_v5 = vmul.f32 %v626_v4, %v155_v63  ;;  %v828_v6 = vmul.f32 %v626_v4, %v156_v0 }
 0x114   :  { %998 = vst [vmem:[%s2389_s2 + $0x490] sm:$0xff] %v829_v2  ;;  %999 = vst.msk [vmem:[%s2389_s2 + $0x498] sm:$0xff] %vm852_vm0, %v830_v3 }
 0x115   :  { %996 = vst [vmem:[%s2389_s2 + $0x480] sm:$0xff] %v827_v5  ;;  %997 = vst.msk [vmem:[%s2389_s2 + $0x488] sm:$0xff] %vm852_vm0, %v828_v6  ;;  %v641_v11 = vpop.permute.xlu1 %640 }
 0x116   :  { %v833_v12 = vmul.f32 %v641_v11, %v161_v7  ;;  %v834_v13 = vmul.f32 %v641_v11, %v162_v8  ;;  %v636_v14 = vpop.permute.xlu0 %635 }
 0x117   :  { %v831_v15 = vmul.f32 %v636_v14, %v159_v9  ;;  %v832_v16 = vmul.f32 %v636_v14, %v160_v10 }
 0x118   :  { %1002 = vst [vmem:[%s2389_s2 + $0x4b0] sm:$0xff] %v833_v12  ;;  %1003 = vst.msk [vmem:[%s2389_s2 + $0x4b8] sm:$0xff] %vm852_vm0, %v834_v13 }
 0x119   :  { %1000 = vst [vmem:[%s2389_s2 + $0x4a0] sm:$0xff] %v831_v15  ;;  %1001 = vst.msk [vmem:[%s2389_s2 + $0x4a8] sm:$0xff] %vm852_vm0, %v832_v16  ;;  %v651_v21 = vpop.permute.xlu1 %650 }
 0x11a   :  { %v837_v22 = vmul.f32 %v651_v21, %v165_v17  ;;  %v838_v23 = vmul.f32 %v651_v21, %v166_v18  ;;  %v646_v24 = vpop.permute.xlu0 %645 }
 0x11b   :  { %v835_v25 = vmul.f32 %v646_v24, %v163_v19  ;;  %v836_v26 = vmul.f32 %v646_v24, %v164_v20 }
 0x11c   :  { %1006 = vst [vmem:[%s2389_s2 + $0x4d0] sm:$0xff] %v837_v22  ;;  %1007 = vst.msk [vmem:[%s2389_s2 + $0x4d8] sm:$0xff] %vm852_vm0, %v838_v23 }
 0x11d   :  { %1004 = vst [vmem:[%s2389_s2 + $0x4c0] sm:$0xff] %v835_v25  ;;  %1005 = vst.msk [vmem:[%s2389_s2 + $0x4c8] sm:$0xff] %vm852_vm0, %v836_v26  ;;  %v661_v31 = vpop.permute.xlu1 %660 }
 0x11e   :  { %v841_v32 = vmul.f32 %v661_v31, %v169_v27  ;;  %v842_v33 = vmul.f32 %v661_v31, %v170_v28  ;;  %v656_v34 = vpop.permute.xlu0 %655 }
 0x11f   :  { %v839_v35 = vmul.f32 %v656_v34, %v167_v29  ;;  %v840_v36 = vmul.f32 %v656_v34, %v168_v30 }
 0x120   :  { %1010 = vst [vmem:[%s2389_s2 + $0x4f0] sm:$0xff] %v841_v32  ;;  %1011 = vst.msk [vmem:[%s2389_s2 + $0x4f8] sm:$0xff] %vm852_vm0, %v842_v33 }
 0x121   :  { %1008 = vst [vmem:[%s2389_s2 + $0x4e0] sm:$0xff] %v839_v35  ;;  %1009 = vst.msk [vmem:[%s2389_s2 + $0x4e8] sm:$0xff] %vm852_vm0, %v840_v36  ;;  %v671_v41 = vpop.permute.xlu1 %670 }
 0x122   :  { %v845_v42 = vmul.f32 %v671_v41, %v173_v37  ;;  %v846_v43 = vmul.f32 %v671_v41, %v174_v38  ;;  %v666_v44 = vpop.permute.xlu0 %665 }
 0x123   :  { %v843_v45 = vmul.f32 %v666_v44, %v171_v39  ;;  %v844_v46 = vmul.f32 %v666_v44, %v172_v40 }
 0x124   :  { %1014 = vst [vmem:[%s2389_s2 + $0x510] sm:$0xff] %v845_v42  ;;  %1015 = vst.msk [vmem:[%s2389_s2 + $0x518] sm:$0xff] %vm852_vm0, %v846_v43 }
 0x125   :  { %1012 = vst [vmem:[%s2389_s2 + $0x500] sm:$0xff] %v843_v45  ;;  %1013 = vst.msk [vmem:[%s2389_s2 + $0x508] sm:$0xff] %vm852_vm0, %v844_v46  ;;  %v681_v51 = vpop.permute.xlu1 %680 }
 0x126   :  { %v849_v52 = vmul.f32 %v681_v51, %v177_v47  ;;  %v850_v53 = vmul.f32 %v681_v51, %v178_v48  ;;  %v676_v54 = vpop.permute.xlu0 %675 }
 0x127   :  { %v847_v55 = vmul.f32 %v676_v54, %v175_v49  ;;  %v848_v56 = vmul.f32 %v676_v54, %v176_v50 }
 0x128   :  { %1018 = vst [vmem:[%s2389_s2 + $0x530] sm:$0xff] %v849_v52  ;;  %1019 = vst.msk [vmem:[%s2389_s2 + $0x538] sm:$0xff] %vm852_vm0, %v850_v53 }
 0x129   :  { %1016 = vst [vmem:[%s2389_s2 + $0x520] sm:$0xff] %v847_v55  ;;  %1017 = vst.msk [vmem:[%s2389_s2 + $0x528] sm:$0xff] %vm852_vm0, %v848_v56 }

</bundles_post_ra>
